<compile_context>
chip_gen: v6e
topology: v6e:2x2x1
jax: 0.10.0
libtpu: 0.0.40
codegen_flags: <defaults>
</compile_context>

<pallas_src>
import math

import jax
import jax.numpy as jnp
from jax.experimental import pallas as pl
from jax.experimental.pallas import tpu as pltpu


def _fbs_kernel(attn_ref, x_ref, o_ref):
    # x_ref: (TM, TN) tile; attn_ref: (1, TN) -> broadcast over the row axis.
    o_ref[...] = (x_ref[...] * attn_ref[...]).astype(o_ref.dtype)


def _chip_generation():
    """Best-effort TPU generation detection (7 / 6 / 5 / None)."""
    try:
        kind = jax.devices()[0].device_kind.lower()
    except Exception:  # pragma: no cover - defensive
        return None
    for gen in (7, 6, 5):
        if f"v{gen}" in kind:
            return gen
    return None


def linear_static_fbs(x: jax.Array, static_channel_attention: jax.Array) -> jax.Array:
    """x: (..., C); static_channel_attention: (1, C). Returns x * attn (broadcast)."""
    assert static_channel_attention.ndim == 2 and static_channel_attention.shape[0] == 1
    *lead, C = x.shape
    assert static_channel_attention.shape[1] == C

    orig_shape = x.shape
    # Match PyTorch type promotion (e.g. fp16/bf16 x * fp32 param -> fp32 out).
    out_dtype = jnp.result_type(x.dtype, static_channel_attention.dtype)
    attn = static_channel_attention.astype(out_dtype)  # cast once, in the wrapper

    rows = 1
    for d in lead:
        rows *= d

    # Degenerate (empty) inputs: no kernel needed.
    if rows == 0 or C == 0:
        return (x.astype(out_dtype)
                * attn.reshape((1,) * (x.ndim - 1) + (C,))).reshape(orig_shape)

    # ---- Build a lane-dense 2D view (R, LANE) of x + matching (1, LANE) attention ----
    if C % 128 == 0:
        LANE, R, pad_rows, fold = C, rows, 0, 1
        attn2 = attn
        x2 = x.reshape(R, LANE)
    else:
        fold = 128 // math.gcd(C, 128)           # channel vectors folded per lane row
        R = -(-rows // fold)                     # cdiv
        pad_rows = R * fold - rows
        LANE = C * fold                          # = lcm(C, 128): lane-dense, no masked stores
        attn2 = jnp.tile(attn, (1, fold))
        xf = x.reshape(rows, C)
        if pad_rows:
            xf = jnp.pad(xf, ((0, pad_rows), (0, 0)))
        x2 = xf.reshape(R, LANE)

    # ---- Generation-aware tile sizing ----
    gen = _chip_generation()
    if gen == 7:
        TILE_BYTES, vmem_cap = 8 << 20, 48 << 20      # 64 MiB physical VMEM per TC
    elif gen == 6:
        TILE_BYTES, vmem_cap = 4 << 20, 96 << 20      # 128 MiB physical VMEM
    else:                                             # v5e / unknown: conservative
        TILE_BYTES, vmem_cap = 2 << 20, 48 << 20

    x_isz = jnp.dtype(x.dtype).itemsize
    o_isz = jnp.dtype(out_dtype).itemsize
    bpe = x_isz + o_isz                               # bytes moved per element (in + out)

    # Dtype-aware sublane packing multiple: f32 -> 8, bf16/fp16 -> 16, int8/fp8 -> 32.
    sublane_mult = max(8, 32 // min(x_isz, o_isz))

    # Prefer full-width lane tiles (single contiguous DMA per row slab); only split
    # the lane dim if even a sublane_mult-row slab would overflow the tile budget.
    if LANE * bpe * sublane_mult <= TILE_BYTES:
        TN = LANE
    else:
        TN = max(128, (TILE_BYTES // (bpe * sublane_mult)) // 128 * 128)

    tm = max(sublane_mult, (TILE_BYTES // (TN * bpe)) // sublane_mult * sublane_mult)
    TM = R if R <= tm else tm

    # Guarantee >=2 grid steps so both v7x TensorCores get work (cheap elsewhere).
    def _nblocks(tm_, tn_):
        return (-(-R // tm_)) * (-(-LANE // tn_))

    while _nblocks(TM, TN) < 2:
        if TM >= 2 * sublane_mult:
            TM = max(sublane_mult, (TM // 2) // sublane_mult * sublane_mult)
        elif TN >= 256:
            TN = max(128, (TN // 2) // 128 * 128)
        else:
            break  # input too small to split legally; single step is fine

    # Explicit scoped-VMEM budget: double-buffered (in + out) tiles + attention + headroom.
    vmem_limit = (2 * TM * TN * x_isz
                  + 2 * TM * TN * o_isz
                  + 2 * TN * o_isz
                  + (4 << 20))
    vmem_limit = int(min(max(vmem_limit, 16 << 20), vmem_cap))

    cost = pl.CostEstimate(
        flops=R * LANE,
        transcendentals=0,
        bytes_accessed=R * LANE * (x_isz + o_isz) + LANE * o_isz,
    )

    # Grid: lane tiles OUTER, row tiles INNER -> the (1, TN) attention tile is
    # resident across the whole inner row sweep (re-fetched only per lane tile).
    out2 = pl.pallas_call(
        _fbs_kernel,
        out_shape=jax.ShapeDtypeStruct((R, LANE), out_dtype),
        grid_spec=pltpu.PrefetchScalarGridSpec(
            num_scalar_prefetch=0,
            grid=(pl.cdiv(LANE, TN), pl.cdiv(R, TM)),
            in_specs=[
                pl.BlockSpec((1, TN), lambda j, i: (0, j)),    # attention (row-resident)
                pl.BlockSpec((TM, TN), lambda j, i: (i, j)),   # x tile
            ],
            out_specs=pl.BlockSpec((TM, TN), lambda j, i: (i, j)),
        ),
        compiler_params=pltpu.CompilerParams(
            dimension_semantics=("parallel", "parallel"),
            vmem_limit_bytes=vmem_limit,
        ),
        cost_estimate=cost,
    )(attn2, x2)

    # Undo the fold / padding and restore the original shape.
    if fold == 1:
        return out2.reshape(orig_shape)
    out_flat = out2.reshape(R * fold, C)
    if pad_rows:
        out_flat = out_flat[:rows]
    return out_flat.reshape(orig_shape)


if __name__ == "__main__":
    key = jax.random.PRNGKey(0)
    k_x, k_a = jax.random.split(key)

    B, N, C = 2, 8, 32  # batch, tokens, hidden
    x = jax.random.normal(k_x, (B, N, C), dtype=jnp.float32)
    # deterministic "static channel attention" parameter, shape (1, C)
    static_channel_attention = jax.nn.sigmoid(
        jax.random.normal(k_a, (1, C), dtype=jnp.float32)
    )

    out = linear_static_fbs(x, static_channel_attention)
    out = jax.block_until_ready(out)

    # reference check (plain JAX, same broadcasting as PyTorch)
    ref = x * static_channel_attention[:, None, :]
    assert out.shape == x.shape
    assert jnp.allclose(out, ref, atol=1e-6, rtol=1e-6)

    # also exercise the padded-fold path (rows not divisible by fold)
    x_odd = jax.random.normal(k_x, (3, 7, C), dtype=jnp.float32)
    out_odd = jax.block_until_ready(linear_static_fbs(x_odd, static_channel_attention))
    ref_odd = x_odd * static_channel_attention[:, None, :]
    assert out_odd.shape == x_odd.shape
    assert jnp.allclose(out_odd, ref_odd, atol=1e-6, rtol=1e-6)

    print("KERNEL_OK")
</pallas_src>

<mosaic_0001>
module attributes {stable_mosaic.version = 11 : i64} {
  func.func @_fbs_kernel(%arg0: i32, %arg1: i32, %arg2: memref<1x128xf32, #tpu.memory_space<vmem>>, %arg3: memref<4x128xf32, #tpu.memory_space<vmem>>, %arg4: memref<4x128xf32, #tpu.memory_space<vmem>>) attributes {dimension_semantics = [#tpu.dimension_semantics<parallel>, #tpu.dimension_semantics<parallel>], iteration_bounds = array<i64: 1, 1>, scalar_prefetch = 0 : i64, scratch_operands = 0 : i64, tpu.core_type = #tpu.core_type<tc>, window_params = [{transform_indices = @transform_0, window_bounds = array<i64: 1, 128>}, {transform_indices = @transform_1, window_bounds = array<i64: 4, 128>}, {transform_indices = @transform_2, window_bounds = array<i64: 4, 128>}]} {
    %c0 = arith.constant 0 : index
    %c0_0 = arith.constant 0 : index
    %0 = vector.load %arg3[%c0, %c0_0] : memref<4x128xf32, #tpu.memory_space<vmem>>, vector<4x128xf32>
    %c0_1 = arith.constant 0 : index
    %c0_2 = arith.constant 0 : index
    %1 = vector.load %arg2[%c0_1, %c0_2] : memref<1x128xf32, #tpu.memory_space<vmem>>, vector<1x128xf32>
    %2 = vector.broadcast %1 : vector<1x128xf32> to vector<4x128xf32>
    %3 = arith.mulf %0, %2 : vector<4x128xf32>
    %c0_3 = arith.constant 0 : index
    %c0_4 = arith.constant 0 : index
    %4 = vector.load %arg4[%c0_3, %c0_4] : memref<4x128xf32, #tpu.memory_space<vmem>>, vector<4x128xf32>
    tpu.vector_store %arg4[%c0_3, %c0_4], %3 {strides = array<i32>} : memref<4x128xf32, #tpu.memory_space<vmem>>, vector<4x128xf32>,
    return
  }
  func.func @transform_0(%arg0: i32, %arg1: i32) -> (i32, i32) {
    %c0_i32 = arith.constant 0 : i32
    %c0_i32_0 = arith.constant 0 : i32
    return %c0_i32, %arg0 : i32, i32
  }
  func.func @transform_1(%arg0: i32, %arg1: i32) -> (i32, i32) {
    %c0_i32 = arith.constant 0 : i32
    return %arg1, %arg0 : i32, i32
  }
  func.func @transform_2(%arg0: i32, %arg1: i32) -> (i32, i32) {
    %c0_i32 = arith.constant 0 : i32
    return %arg1, %arg0 : i32, i32
  }
}

</mosaic_0001>

<bundles_post_ra>
// kernel: tpu_custom_call.1
= control target key start
LH: loop header
LB: loop body
LE: loop exit
PB: predicated region body
PF: predicated region fallthrough
CT: control target
= control target key end

     0   :  { %7 = vsyncpa [#allocation3], 0  ;;  %s159_s0 = inlined_call_operand.hbm [shape: f32[1,128], index: 0, kind: input, shape index: {}]   ;;  %s160_s1 = inlined_call_operand.hbm [shape: f32[4,128], index: 1, kind: input, shape index: {}]   ;;  %s161_s2 = inlined_call_operand.hbm [shape: f32[4,128], index: 2, kind: output, shape index: {}]  }
   0x1   :  { %8 = vsyncpa [#allocation6], 0 }
   0x2   :  { %9 = vsyncpa [#allocation4], 0  ;;  %s132_s9 = smov [#allocation2]   ;;  %s133_s11 = smov [#allocation5]  }
   0x3   :  { %s16_s10 = sshll.u32 %s132_s9, 4  ;;  %s26_s12 = sshll.u32 %s133_s11, 4  ;;  %s17_s10 = int_to_ptr.vmem [resolvable:$true] %s16_s10  ;;  %s27_s12 = int_to_ptr.vmem [resolvable:$true] %s26_s12 }
   0x4   :  { %s74_s13 = scalar_lea.vmem %s17_s10, 16  ;;  %s78_s14 = scalar_lea.vmem %s17_s10, 32 }
   0x5   :  { %p75_p0 = scmp.ne.s32.totalorder %s17_s10, %s74_s13  ;;  %p79_p1 = scmp.lt.s32.totalorder %s17_s10, %s17_s10 }
   0x6   :  { %p80_p2 = scmp.lt.s32.totalorder %s78_s14, %s74_s13 }
   0x8   :  { %p81_p3 = por %p80_p2, %p79_p1 }
   0xa   :  { %p82_p4 = pnand %p81_p3, %p75_p0 }
   0xc   :  { %85 = shalt.err (!%p82_p4)
}
   0xd   :  { %19 = dma.hbm_to_vmem [thread:$0]  %s159_s0, 16, %s17_s10, [#allocation3]  }
   0xe   :  { %s94_s17 = scalar_lea.vmem %s27_s12, 64  ;;  %p99_p6 = scmp.lt.s32.totalorder %s27_s12, %s27_s12 }
   0xf   :  { %p95_p5 = scmp.ne.s32.totalorder %s27_s12, %s94_s17  ;;  %p100_p7 = scmp.lt.s32.totalorder %s94_s17, %s94_s17 }
  0x11   :  { %p101_p8 = por %p100_p7, %p99_p6 }
  0x13   :  { %p102_p9 = pnand %p101_p8, %p95_p5 }
  0x15   :  { %105 = shalt.err (!%p102_p9)
}
  0x16   :  { %29 = dma.hbm_to_vmem [thread:$0]  %s160_s1, 64, %s27_s12, [#allocation6]  }
  0x17   :  { %126 = dma.done.wait [#allocation3], 16  }
  0x18   :  { %127 = vsyncadd [#allocation3], 4294967280 }
  0x19   :  { %128 = dma.done.wait [#allocation6], 64  }
  0x1a   :  { %129 = vsyncadd [#allocation6], 4294967232  ;;  %s134_s20 = smov [#allocation7]   ;;  %v36_v0 = vld [vmem:[#allocation5] sm:$0xf] }
  0x1b   :  { %s52_s21 = sshll.u32 %s134_s20, 4  ;;  %v62_v1 = vld [vmem:[#allocation2] ss:$0 sm:$0xff]  ;;  %s53_s21 = int_to_ptr.vmem [resolvable:$true] %s52_s21 }
  0x1c   :  { %v44_v2 = vmul.f32 %v62_v1, %v36_v0  ;;  %s106_s0 = scalar_lea.vmem %s53_s21, 64  ;;  %p111_p11 = scmp.lt.s32.totalorder %s53_s21, %s53_s21 }
  0x1d   :  { %p107_p10 = scmp.ne.s32.totalorder %s53_s21, %s106_s0  ;;  %p112_p12 = scmp.lt.s32.totalorder %s106_s0, %s106_s0 }
  0x1e   :  { %45 = vst [vmem:[#allocation7] sm:$0xf] %v44_v2 }
  0x1f   :  { %p113_p13 = por %p112_p12, %p111_p11 }
  0x21   :  { %p114_p0 = pnand %p113_p13, %p107_p10 }
  0x23   :  { %117 = shalt.err (!%p114_p0)
}
  0x24   :  { %55 = dma.vmem_to_hbm [thread:$0]  %s53_s21, 64, %s161_s2, [#allocation4]  }
  0x25   :  { %130 = dma.done.wait [#allocation4], 64  }
  0x26   :  { %131 = vsyncadd [#allocation4], 4294967232 }
  0x27   :  { %59 = vsyncpa [#allocation3], 1 }
  0x28   :  { %60 = vsyncpa [#allocation6], 1 }
  0x29   :  { %61 = vsyncpa [#allocation4], 1 }

</bundles_post_ra>
